<compile_context>
chip_gen: v5e
topology: v5e:2x2
jax: 0.10.0
libtpu: 0.0.40
codegen_flags: <defaults>
</compile_context>

<pallas_src>
import jax
import jax.numpy as jnp
from jax.experimental import pallas as pl
from jax.experimental.pallas import tpu as pltpu

_LANE = 128


def _round_up(x, m):
    return ((x + m - 1) // m) * m


def _bc_kernel(scale_ref, x_ref, w1_ref, b1_ref, w2_ref, b2_ref, w3_ref, b3_ref,
               out_ref):
    """Fused 3-layer tanh MLP for one batch tile (all three matmuls on the MXU,
    tanh on the EUP). Weights are bf16, accumulation f32, biases f32."""
    scale = scale_ref[0, 0]
    x = x_ref[...].astype(jnp.bfloat16)
    h = jnp.tanh(
        jnp.dot(x, w1_ref[...], preferred_element_type=jnp.float32)
        + b1_ref[...])
    h = jnp.tanh(
        jnp.dot(h.astype(jnp.bfloat16), w2_ref[...],
                preferred_element_type=jnp.float32)
        + b2_ref[...])
    h = jnp.tanh(
        jnp.dot(h.astype(jnp.bfloat16), w3_ref[...],
                preferred_element_type=jnp.float32)
        + b3_ref[...])
    out_ref[...] = (scale * h).astype(out_ref.dtype)


def pack_params(params):
    """Pad hidden/output dims to multiples of 128 and cast weights to bf16.

    Exactness: padded bias entries are 0 so padded activations are tanh(0)=0,
    and zero-padded weight rows/columns contribute nothing downstream.
    """
    def pad2(a, rows, cols):
        return jnp.pad(a, ((0, rows - a.shape[0]), (0, cols - a.shape[1])))

    S, H1 = params["w1"].shape
    H2 = params["w2"].shape[1]
    A = params["w3"].shape[1]
    H1p, H2p, Ap = (_round_up(d, _LANE) for d in (H1, H2, A))

    return {
        "w1": pad2(params["w1"], S, H1p).astype(jnp.bfloat16),
        "b1": pad2(params["b1"], 1, H1p).astype(jnp.float32),
        "w2": pad2(params["w2"], H1p, H2p).astype(jnp.bfloat16),
        "b2": pad2(params["b2"], 1, H2p).astype(jnp.float32),
        "w3": pad2(params["w3"], H2p, Ap).astype(jnp.bfloat16),
        "b3": pad2(params["b3"], 1, Ap).astype(jnp.float32),
    }


def bc_forward(state, packed, max_action, action_dim):
    """Pallas TPU forward pass of the BC policy.

    state:  (B, state_dim) float32
    packed: output of pack_params (padded, bf16 weights / f32 biases)
    """
    w1, b1 = packed["w1"], packed["b1"]
    w2, b2 = packed["w2"], packed["b2"]
    w3, b3 = packed["w3"], packed["b3"]

    B, S = state.shape
    H1, H2, Ap = w1.shape[1], w2.shape[1], w3.shape[1]

    # Batch tiling: big tiles pipeline state-DMA against compute; the grid
    # axis is parallel so v7x's two TensorCores split the batch.
    TB = 512 if B >= 512 else _round_up(B, 8)
    Bp = _round_up(B, TB)
    if Bp != B:
        state = jnp.pad(state, ((0, Bp - B), (0, 0)))

    scale = jnp.asarray(max_action, jnp.float32).reshape(1, 1)

    out = pl.pallas_call(
        _bc_kernel,
        out_shape=jax.ShapeDtypeStruct((Bp, Ap), state.dtype),
        grid=(Bp // TB,),
        in_specs=[
            pl.BlockSpec(memory_space=pltpu.MemorySpace.SMEM),  # max_action
            pl.BlockSpec((TB, S), lambda i: (i, 0)),            # state tile
            pl.BlockSpec((S, H1), lambda i: (0, 0)),             # weights stay
            pl.BlockSpec((1, H1), lambda i: (0, 0)),             # resident in
            pl.BlockSpec((H1, H2), lambda i: (0, 0)),            # VMEM across
            pl.BlockSpec((1, H2), lambda i: (0, 0)),             # batch tiles
            pl.BlockSpec((H2, Ap), lambda i: (0, 0)),
            pl.BlockSpec((1, Ap), lambda i: (0, 0)),
        ],
        out_specs=pl.BlockSpec((TB, Ap), lambda i: (i, 0)),
        compiler_params=pltpu.CompilerParams(
            dimension_semantics=("parallel",),
            vmem_limit_bytes=16 << 20),
    )(scale, state, w1, b1, w2, b2, w3, b3)

    return out[:B, :action_dim]


def init_params(key, state_dim, action_dim):
    """Deterministic synthetic parameter init (PyTorch-Linear-like uniform),
    stored (in_features, out_features)."""
    keys = jax.random.split(key, 6)

    def linear(kw, kb, fan_in, fan_out):
        bound = 1.0 / jnp.sqrt(float(fan_in))
        w = jax.random.uniform(kw, (fan_in, fan_out), jnp.float32, -bound, bound)
        b = jax.random.uniform(kb, (1, fan_out), jnp.float32, -bound, bound)
        return w, b

    w1, b1 = linear(keys[0], keys[1], state_dim, 400)
    w2, b2 = linear(keys[2], keys[3], 400, 300)
    w3, b3 = linear(keys[4], keys[5], 300, action_dim)
    return {"w1": w1, "b1": b1, "w2": w2, "b2": b2, "w3": w3, "b3": b3}


def bc_reference(state, params, max_action):
    a = jnp.tanh(state @ params["w1"] + params["b1"])
    a = jnp.tanh(a @ params["w2"] + params["b2"])
    return max_action * jnp.tanh(a @ params["w3"] + params["b3"])


if __name__ == "__main__":
    key = jax.random.PRNGKey(0)
    k_param, k_state = jax.random.split(key)

    batch = 2
    state_dim = 16
    action_dim = 4
    max_action = 2.0

    params = init_params(k_param, state_dim, action_dim)
    # The model's weights are the bf16-rounded ones (what the kernel uses);
    # the reference uses the same weights upcast to f32.
    params = {
        k: (v.astype(jnp.bfloat16).astype(jnp.float32) if k.startswith("w") else v)
        for k, v in params.items()
    }
    packed = pack_params(params)

    state = jax.random.normal(k_state, (batch, state_dim), jnp.float32)

    out = bc_forward(state, packed, max_action, action_dim)
    out = jax.block_until_ready(out)

    ref = bc_reference(state, params, max_action)
    assert out.shape == (batch, action_dim), out.shape
    # Kernel casts activations to bf16 before each MXU matmul (f32 accumulate),
    # so allow a small mixed-precision tolerance vs. the pure-f32 reference.
    assert jnp.allclose(out, ref, atol=5e-2, rtol=5e-2), (out, ref)

    print("KERNEL_OK")
</pallas_src>

<mosaic_0001>
module attributes {stable_mosaic.version = 11 : i64} {
  func.func @_bc_kernel(%arg0: i32, %arg1: memref<1x1xf32, #tpu.memory_space<smem>>, %arg2: memref<8x16xf32, #tpu.memory_space<vmem>>, %arg3: memref<16x512xbf16, #tpu.memory_space<vmem>>, %arg4: memref<1x512xf32, #tpu.memory_space<vmem>>, %arg5: memref<512x384xbf16, #tpu.memory_space<vmem>>, %arg6: memref<1x384xf32, #tpu.memory_space<vmem>>, %arg7: memref<384x128xbf16, #tpu.memory_space<vmem>>, %arg8: memref<1x128xf32, #tpu.memory_space<vmem>>, %arg9: memref<8x128xf32, #tpu.memory_space<vmem>>) attributes {dimension_semantics = [#tpu.dimension_semantics<parallel>], iteration_bounds = array<i64: 1>, scalar_prefetch = 0 : i64, scratch_operands = 0 : i64, tpu.core_type = #tpu.core_type<tc>, window_params = [{transform_indices = @transform_0, window_bounds = array<i64: 1, 1>}, {transform_indices = @transform_1, window_bounds = array<i64: 8, 16>}, {pipeline_mode = #tpu.pipeline_mode<synchronous>, transform_indices = @transform_2, window_bounds = array<i64: 16, 512>}, {pipeline_mode = #tpu.pipeline_mode<synchronous>, transform_indices = @transform_3, window_bounds = array<i64: 1, 512>}, {pipeline_mode = #tpu.pipeline_mode<synchronous>, transform_indices = @transform_4, window_bounds = array<i64: 512, 384>}, {pipeline_mode = #tpu.pipeline_mode<synchronous>, transform_indices = @transform_5, window_bounds = array<i64: 1, 384>}, {pipeline_mode = #tpu.pipeline_mode<synchronous>, transform_indices = @transform_6, window_bounds = array<i64: 384, 128>}, {pipeline_mode = #tpu.pipeline_mode<synchronous>, transform_indices = @transform_7, window_bounds = array<i64: 1, 128>}, {transform_indices = @transform_8, window_bounds = array<i64: 8, 128>}]} {
    %c0 = arith.constant 0 : index
    %c0_0 = arith.constant 0 : index
    %0 = memref.load %arg1[%c0, %c0_0] : memref<1x1xf32, #tpu.memory_space<smem>>
    %c0_1 = arith.constant 0 : index
    %c0_2 = arith.constant 0 : index
    %1 = vector.load %arg2[%c0_1, %c0_2] : memref<8x16xf32, #tpu.memory_space<vmem>>, vector<8x16xf32>
    %2 = arith.truncf %1 : vector<8x16xf32> to vector<8x16xbf16>
    %c0_3 = arith.constant 0 : index
    %c0_4 = arith.constant 0 : index
    %3 = vector.load %arg3[%c0_3, %c0_4] : memref<16x512xbf16, #tpu.memory_space<vmem>>, vector<16x512xbf16>
    %cst = arith.constant dense<0.000000e+00> : vector<8x512xf32>
    %4 = tpu.matmul %2, %3, %cst {dimension_numbers = #tpu.dot_dimension_numbers<[1], [0], [0], [1], [0, 0, 1, 1], [], []>} : vector<8x16xbf16>, vector<16x512xbf16>, vector<8x512xf32> -> vector<8x512xf32>
    %c0_5 = arith.constant 0 : index
    %c0_6 = arith.constant 0 : index
    %5 = vector.load %arg4[%c0_5, %c0_6] : memref<1x512xf32, #tpu.memory_space<vmem>>, vector<1x512xf32>
    %6 = vector.broadcast %5 : vector<1x512xf32> to vector<8x512xf32>
    %7 = arith.addf %4, %6 : vector<8x512xf32>
    %8 = math.tanh %7 : vector<8x512xf32>
    %9 = arith.truncf %8 : vector<8x512xf32> to vector<8x512xbf16>
    %c0_7 = arith.constant 0 : index
    %c0_8 = arith.constant 0 : index
    %10 = vector.load %arg5[%c0_7, %c0_8] : memref<512x384xbf16, #tpu.memory_space<vmem>>, vector<512x384xbf16>
    %cst_9 = arith.constant dense<0.000000e+00> : vector<8x384xf32>
    %11 = tpu.matmul %9, %10, %cst_9 {dimension_numbers = #tpu.dot_dimension_numbers<[1], [0], [0], [1], [0, 0, 1, 1], [], []>} : vector<8x512xbf16>, vector<512x384xbf16>, vector<8x384xf32> -> vector<8x384xf32>
    %c0_10 = arith.constant 0 : index
    %c0_11 = arith.constant 0 : index
    %12 = vector.load %arg6[%c0_10, %c0_11] : memref<1x384xf32, #tpu.memory_space<vmem>>, vector<1x384xf32>
    %13 = vector.broadcast %12 : vector<1x384xf32> to vector<8x384xf32>
    %14 = arith.addf %11, %13 : vector<8x384xf32>
    %15 = math.tanh %14 : vector<8x384xf32>
    %16 = arith.truncf %15 : vector<8x384xf32> to vector<8x384xbf16>
    %c0_12 = arith.constant 0 : index
    %c0_13 = arith.constant 0 : index
    %17 = vector.load %arg7[%c0_12, %c0_13] : memref<384x128xbf16, #tpu.memory_space<vmem>>, vector<384x128xbf16>
    %cst_14 = arith.constant dense<0.000000e+00> : vector<8x128xf32>
    %18 = tpu.matmul %16, %17, %cst_14 {dimension_numbers = #tpu.dot_dimension_numbers<[1], [0], [0], [1], [0, 0, 1, 1], [], []>} : vector<8x384xbf16>, vector<384x128xbf16>, vector<8x128xf32> -> vector<8x128xf32>
    %c0_15 = arith.constant 0 : index
    %c0_16 = arith.constant 0 : index
    %19 = vector.load %arg8[%c0_15, %c0_16] : memref<1x128xf32, #tpu.memory_space<vmem>>, vector<1x128xf32>
    %20 = vector.broadcast %19 : vector<1x128xf32> to vector<8x128xf32>
    %21 = arith.addf %18, %20 : vector<8x128xf32>
    %22 = math.tanh %21 : vector<8x128xf32>
    %23 = vector.broadcast %0 : f32 to vector<8x128xf32>
    %24 = arith.mulf %23, %22 : vector<8x128xf32>
    %c0_17 = arith.constant 0 : index
    %c0_18 = arith.constant 0 : index
    %25 = vector.load %arg9[%c0_17, %c0_18] : memref<8x128xf32, #tpu.memory_space<vmem>>, vector<8x128xf32>
    tpu.vector_store %arg9[%c0_17, %c0_18], %24 {strides = array<i32>} : memref<8x128xf32, #tpu.memory_space<vmem>>, vector<8x128xf32>,
    return
  }
  func.func @transform_0(%arg0: i32) -> (i32, i32) {
    %c0_i32 = arith.constant 0 : i32
    %c0_i32_0 = arith.constant 0 : i32
    %c0_i32_1 = arith.constant 0 : i32
    return %c0_i32, %c0_i32_0 : i32, i32
  }
  func.func @transform_1(%arg0: i32) -> (i32, i32) {
    %c0_i32 = arith.constant 0 : i32
    %c0_i32_0 = arith.constant 0 : i32
    return %arg0, %c0_i32 : i32, i32
  }
  func.func @transform_2(%arg0: i32) -> (i32, i32) {
    %c0_i32 = arith.constant 0 : i32
    %c0_i32_0 = arith.constant 0 : i32
    %c0_i32_1 = arith.constant 0 : i32
    return %c0_i32, %c0_i32_0 : i32, i32
  }
  func.func @transform_3(%arg0: i32) -> (i32, i32) {
    %c0_i32 = arith.constant 0 : i32
    %c0_i32_0 = arith.constant 0 : i32
    %c0_i32_1 = arith.constant 0 : i32
    return %c0_i32, %c0_i32_0 : i32, i32
  }
  func.func @transform_4(%arg0: i32) -> (i32, i32) {
    %c0_i32 = arith.constant 0 : i32
    %c0_i32_0 = arith.constant 0 : i32
    %c0_i32_1 = arith.constant 0 : i32
    return %c0_i32, %c0_i32_0 : i32, i32
  }
  func.func @transform_5(%arg0: i32) -> (i32, i32) {
    %c0_i32 = arith.constant 0 : i32
    %c0_i32_0 = arith.constant 0 : i32
    %c0_i32_1 = arith.constant 0 : i32
    return %c0_i32, %c0_i32_0 : i32, i32
  }
  func.func @transform_6(%arg0: i32) -> (i32, i32) {
    %c0_i32 = arith.constant 0 : i32
    %c0_i32_0 = arith.constant 0 : i32
    %c0_i32_1 = arith.constant 0 : i32
    return %c0_i32, %c0_i32_0 : i32, i32
  }
  func.func @transform_7(%arg0: i32) -> (i32, i32) {
    %c0_i32 = arith.constant 0 : i32
    %c0_i32_0 = arith.constant 0 : i32
    %c0_i32_1 = arith.constant 0 : i32
    return %c0_i32, %c0_i32_0 : i32, i32
  }
  func.func @transform_8(%arg0: i32) -> (i32, i32) {
    %c0_i32 = arith.constant 0 : i32
    %c0_i32_0 = arith.constant 0 : i32
    return %arg0, %c0_i32 : i32, i32
  }
}

</mosaic_0001>

<bundles_post_ra>
// kernel: tpu_custom_call.1
= control target key start
LH: loop header
LB: loop body
LE: loop exit
PB: predicated region body
PF: predicated region fallthrough
CT: control target
= control target key end

     0   :  { %14 = vsyncpa [#allocation4], 0  ;;  %s2200_s0 = inlined_call_operand.<no memory space> [shape: f32[1,1], index: 0, kind: input, shape index: {}]   ;;  %s2201_s1 = inlined_call_operand.hbm [shape: f32[8,16], index: 1, kind: input, shape index: {}]   ;;  %s2202_s2 = inlined_call_operand.hbm [shape: bf16[16,512], index: 2, kind: input, shape index: {}]   ;;  %s2203_s3 = inlined_call_operand.hbm [shape: f32[1,512], index: 3, kind: input, shape index: {}]   ;;  %s2204_s4 = inlined_call_operand.hbm [shape: bf16[512,384], index: 4, kind: input, shape index: {}]   ;;  %s2205_s5 = inlined_call_operand.vmem [shape: f32[1,384], index: 5, kind: input, shape index: {}]   ;;  %s2206_s6 = inlined_call_operand.hbm [shape: bf16[384,128], index: 6, kind: input, shape index: {}]   ;;  %s2207_s7 = inlined_call_operand.vmem [shape: f32[1,128], index: 7, kind: input, shape index: {}]   ;;  %s2208_s8 = inlined_call_operand.hbm [shape: f32[8,128], index: 8, kind: output, shape index: {}]  }
   0x1   :  { %15 = vsyncpa [#allocation7], 0 }
   0x2   :  { %16 = vsyncpa [#allocation10], 0  ;;  %s35_s29 = sshll.u32 %s2202_s2, 4  ;;  %s36_s29 = int_to_ptr.hbm [resolvable:$true] %s35_s29 }
   0x3   :  { %17 = vsyncpa [#allocation5], 0  ;;  %s2080_s30 = smov [#allocation6]   ;;  %s59_s12 = sshll.u32 %s2204_s4, 4  ;;  %s60_s12 = int_to_ptr.hbm [resolvable:$true] %s59_s12 }
   0x4   :  { %s37_s9 = sshll.u32 %s2080_s30, 4  ;;  %s2081_s13 = smov 256   ;;  %s38_s9 = int_to_ptr.vmem [resolvable:$true] %s37_s9 }
   0x5   :  { %s2082_s14 = smov 16   ;;  %s2083_s15 = smov [#allocation9]  }
   0x6   :  { %43 = dma.hbm_to_vmem [thread:$0]  %s36_s29, 512, %s38_s9, [#allocation7], %s2081_s13, %s2081_s13, %s2082_s14  }
   0x7   :  { %s61_s16 = sshll.u32 %s2083_s15, 4  ;;  %s2084_s17 = smov 192   ;;  %s62_s16 = int_to_ptr.vmem [resolvable:$true] %s61_s16 }
   0x8   :  { %s2085_s18 = smov 12   ;;  %s25_s20 = sshll.u32 %s2201_s1, 4  ;;  %s26_s20 = int_to_ptr.hbm [resolvable:$true] %s25_s20 }
   0x9   :  { %67 = dma.hbm_to_vmem [thread:$0]  %s60_s12, 12288, %s62_s16, [#allocation10], %s2084_s17, %s2084_s17, %s2085_s18  }
   0xa   :  { %s2086_s21 = smov [#allocation3]   ;;  %s49_s24 = sshll.u32 %s2203_s3, 4  ;;  %s50_s24 = int_to_ptr.hbm [resolvable:$true] %s49_s24 }
   0xb   :  { %s27_s22 = sshll.u32 %s2086_s21, 4  ;;  %s2087_s25 = smov [#allocation8]   ;;  %s28_s22 = int_to_ptr.vmem [resolvable:$true] %s27_s22 }
   0xc   :  { %30 = dma.hbm_to_vmem [thread:$0]  %s26_s20, 128, %s28_s22, [#allocation4]  }
   0xd   :  { %s51_s26 = sshll.u32 %s2087_s25, 4  ;;  %s74_s29 = sshll.u32 %s2206_s6, 4  ;;  %s52_s26 = int_to_ptr.vmem [resolvable:$true] %s51_s26  ;;  %s75_s29 = int_to_ptr.hbm [resolvable:$true] %s74_s29 }
   0xe   :  { %54 = dma.hbm_to_vmem [thread:$0]  %s50_s24, 64, %s52_s26, [#allocation7]  }
   0xf   :  { %s2088_s1 = smov [#allocation11]   ;;  %s2089_s9 = smov 64  }
  0x10   :  { %s76_s30 = sshll.u32 %s2088_s1, 4  ;;  %s2090_s10 = smov 4   ;;  %s77_s30 = int_to_ptr.vmem [resolvable:$true] %s76_s30 }
  0x11   :  { %82 = dma.hbm_to_vmem [thread:$0]  %s75_s29, 3072, %s77_s30, [#allocation10], %s2089_s9, %s2089_s9, %s2090_s10  }
  0x12   :  { %2072 = dma.done.wait [#allocation4], 128  }
  0x13   :  { %2073 = vsyncadd [#allocation4], 4294967168 }
  0x14   :  { %2074 = dma.done.wait [#allocation7], 576  }
  0x15   :  { %2075 = vsyncadd [#allocation7], 4294966720 }
  0x16   :  { %2076 = dma.done.wait [#allocation10], 15360  }
  0x17   :  { %2077 = vsyncadd [#allocation10], 4294951936  ;;  %v1277_v0 = vld [vmem:[#allocation6] sm:$0xf]  ;;  %v1777_v1 = vld [vmem:[#allocation6 + $0xc] sm:$0xf0] }
  0x18   :  { %v1775_v2 = vld [vmem:[#allocation6 + $0x4] sm:$0xf]  ;;  %v1278_v3 = vor.u32 %v1777_v1, %v1277_v0  ;;  %v1279_v4 = vld [vmem:[#allocation6 + $0x10] sm:$0xf0]  ;;  %v1285_v5 = vld [vmem:[#allocation6 + $0x8] sm:$0xf] }
  0x19   :  { %v1778_v6 = vld [vmem:[#allocation6 + $0x14] sm:$0xf0]  ;;  %v1282_v7 = vor.u32 %v1775_v2, %v1279_v4  ;;  %vm143_vm0 = vcmask 130048   ;;  %v1776_v10 = vld [vmem:[#allocation6 + $0xc] sm:$0xf]  ;;  %s2091_s14 = smov [#allocation12]  }
  0x1a   :  { %v1286_v8 = vor.u32 %v1778_v6, %v1285_v5  ;;  %v107_v9 = vld [vmem:[#allocation3] sm:$0xff]  ;;  %154 = vmatpush.bf16.msra.mxu3 %v1278_v3  ;;  %v1477_v14 = vld [vmem:[#allocation9 + $0x168] sm:$0xf]  ;;  %v1465_v16 = vld [vmem:[#allocation9 + $0x150] sm:$0xf]  ;;  %s1261_s15 = sshll.u32 %s2091_s14, 4  ;;  %s1262_s15 = int_to_ptr.vmem [resolvable:$true] %s1261_s15 }
  0x1b   :  { %v1287_v11 = vld [vmem:[#allocation6 + $0x18] sm:$0xf0]  ;;  %v2152_v12 = vpack.c.bf16 %v107_v9, %v107_v9  ;;  %v1825_v15 = vld [vmem:[#allocation9 + $0x170] sm:$0xf0]  ;;  %167 = vmatpush.bf16.msra.mxu1 %v1282_v7  ;;  %v1822_v18 = vld [vmem:[#allocation9 + $0x158] sm:$0xf0] }
  0x1c   :  { %v1290_v13 = vor.u32 %v1776_v10, %v1287_v11  ;;  %180 = vmatpush.bf16.msra.mxu2 %v1286_v8  ;;  %v1478_v17 = vor.u32 %v1825_v15, %v1477_v14  ;;  %v1381_v19 = vld [vmem:[#allocation9 + $0xa8] sm:$0xf]  ;;  %v1801_v20 = vld [vmem:[#allocation9 + $0xb0] sm:$0xf0]  ;;  %v1466_v24 = vor.u32 %v1822_v18, %v1465_v16  ;;  %v1453_v26 = vld [vmem:[#allocation9 + $0x138] sm:$0xf] }
  0x1d   :  { %v1382_v21 = vor.u32 %v1801_v20, %v1381_v19  ;;  %v1573_v22 = vld [vmem:[#allocation9 + $0x228] sm:$0xf]  ;;  %v1849_v23 = vld [vmem:[#allocation9 + $0x230] sm:$0xf0]  ;;  %1291 = vmatmul.msk.bf16.vlgmr.msra.gmra.mxu3 %vm143_vm0, %v2152_v12  ;;  %v1369_v27 = vld [vmem:[#allocation9 + $0x90] sm:$0xf] }
  0x1e   :  { %193 = vmatpush.bf16.msrb.mxu3 %v1290_v13  ;;  %v1574_v25 = vor.u32 %v1849_v23, %v1573_v22  ;;  %v1798_v28 = vld [vmem:[#allocation9 + $0x98] sm:$0xf0]  ;;  %1292 = vmatmul.msk.bf16.vlgmr.msra.gmra.mxu1 %vm143_vm0, %v2152_v12  ;;  %v1819_v29 = vld [vmem:[#allocation9 + $0x140] sm:$0xf0]  ;;  %v1561_v30 = vld [vmem:[#allocation9 + $0x210] sm:$0xf] }
  0x1f   :  { %868 = vmatpush.bf16.msrb.mxu1 %v1478_v17  ;;  %1293 = vmatmul.msk.bf16.vlgmr.msra.gmra.mxu2 %vm143_vm0, %v2152_v12  ;;  %v1846_v31 = vld [vmem:[#allocation9 + $0x218] sm:$0xf0]  ;;  %v1370_v32 = vor.u32 %v1798_v28, %v1369_v27  ;;  %v1357_v34 = vld [vmem:[#allocation9 + $0x78] sm:$0xf]  ;;  %v1795_v35 = vld [vmem:[#allocation9 + $0x80] sm:$0xf0]  ;;  %v1454_v38 = vor.u32 %v1819_v29, %v1453_v26 }
  0x20   :  { %855 = vmatpush.bf16.msra.mxu0 %v1382_v21  ;;  %881 = vmatpush.bf16.msrb.mxu2 %v1574_v25  ;;  %v1562_v33 = vor.u32 %v1846_v31, %v1561_v30  ;;  %v1549_v36 = vld [vmem:[#allocation9 + $0x1f8] sm:$0xf]  ;;  %v1843_v37 = vld [vmem:[#allocation9 + $0x200] sm:$0xf0]  ;;  %v1441_v39 = vld [vmem:[#allocation9 + $0x120] sm:$0xf]  ;;  %v1358_v41 = vor.u32 %v1795_v35, %v1357_v34 }
  0x21   :  { %v1816_v40 = vld [vmem:[#allocation9 + $0x128] sm:$0xf0]  ;;  %v1550_v42 = vor.u32 %v1843_v37, %v1549_v36  ;;  %v1345_v43 = vld [vmem:[#allocation9 + $0x60] sm:$0xf]  ;;  %v1669_v47 = vld [vmem:[#allocation9 + $0x2e8] sm:$0xf] }
  0x22   :  { %v1792_v44 = vld [vmem:[#allocation9 + $0x68] sm:$0xf0]  ;;  %v1537_v45 = vld [vmem:[#allocation9 + $0x1e0] sm:$0xf]  ;;  %v1442_v48 = vor.u32 %v1816_v40, %v1441_v39  ;;  %v1873_v49 = vld [vmem:[#allocation9 + $0x2f0] sm:$0xf0] }
  0x23   :  { %869 = vmatpush.bf16.msrb.mxu1 %v1466_v24  ;;  %v1840_v46 = vld [vmem:[#allocation9 + $0x1e8] sm:$0xf0]  ;;  %v1429_v50 = vld [vmem:[#allocation9 + $0x108] sm:$0xf]  ;;  %v1813_v51 = vld [vmem:[#allocation9 + $0x110] sm:$0xf0]  ;;  %v1670_v52 = vor.u32 %v1873_v49, %v1669_v47  ;;  %v1346_v53 = vor.u32 %v1792_v44, %v1345_v43 }
  0x24   :  { %856 = vmatpush.bf16.msra.mxu0 %v1370_v32  ;;  %882 = vmatpush.bf16.msrb.mxu2 %v1562_v33  ;;  %v1538_v54 = vor.u32 %v1840_v46, %v1537_v45  ;;  %v1333_v55 = vld [vmem:[#allocation9 + $0x48] sm:$0xf]  ;;  %v1657_v56 = vld [vmem:[#allocation9 + $0x2d0] sm:$0xf]  ;;  %v1870_v57 = vld [vmem:[#allocation9 + $0x2d8] sm:$0xf0]  ;;  %v1430_v62 = vor.u32 %v1813_v51, %v1429_v50 }
  0x25   :  { %v1789_v58 = vld [vmem:[#allocation9 + $0x50] sm:$0xf0]  ;;  %v1525_v59 = vld [vmem:[#allocation9 + $0x1c8] sm:$0xf]  ;;  %894 = vmatpush.bf16.msra.mxu3 %v1670_v52  ;;  %v1658_v61 = vor.u32 %v1870_v57, %v1657_v56  ;;  %v1417_v63 = vld [vmem:[#allocation9 + $0xf0] sm:$0xf] }
  0x26   :  { %v1837_v60 = vld [vmem:[#allocation9 + $0x1d0] sm:$0xf0]  ;;  %v1810_v0 = vld [vmem:[#allocation9 + $0xf8] sm:$0xf0]  ;;  %v1645_v1 = vld [vmem:[#allocation9 + $0x2b8] sm:$0xf]  ;;  %v1334_v2 = vor.u32 %v1789_v58, %v1333_v55 }
  0x27   :  { %870 = vmatpush.bf16.msrb.mxu1 %v1454_v38  ;;  %v1526_v3 = vor.u32 %v1837_v60, %v1525_v59  ;;  %v1321_v4 = vld [vmem:[#allocation9 + $0x30] sm:$0xf]  ;;  %v1867_v5 = vld [vmem:[#allocation9 + $0x2c0] sm:$0xf0]  ;;  %v1786_v6 = vld [vmem:[#allocation9 + $0x38] sm:$0xf0]  ;;  %v1418_v10 = vor.u32 %v1810_v0, %v1417_v63 }
  0x28   :  { %857 = vmatpush.bf16.msra.mxu0 %v1358_v41  ;;  %883 = vmatpush.bf16.msrb.mxu2 %v1550_v42  ;;  %v1513_v7 = vld [vmem:[#allocation9 + $0x1b0] sm:$0xf]  ;;  %v1834_v8 = vld [vmem:[#allocation9 + $0x1b8] sm:$0xf0]  ;;  %v1646_v9 = vor.u32 %v1867_v5, %v1645_v1  ;;  %v1633_v11 = vld [vmem:[#allocation9 + $0x2a0] sm:$0xf]  ;;  %v1322_v16 = vor.u32 %v1786_v6, %v1321_v4 }
  0x29   :  { %895 = vmatpush.bf16.msra.mxu3 %v1658_v61  ;;  %v1864_v13 = vld [vmem:[#allocation9 + $0x2a8] sm:$0xf0]  ;;  %v1405_v14 = vld [vmem:[#allocation9 + $0xd8] sm:$0xf]  ;;  %v1807_v15 = vld [vmem:[#allocation9 + $0xe0] sm:$0xf0]  ;;  %v1514_v17 = vor.u32 %v1834_v8, %v1513_v7 }
  0x2a   :  { %v1309_v18 = vld [vmem:[#allocation9 + $0x18] sm:$0xf]  ;;  %v1783_v19 = vld [vmem:[#allocation9 + $0x20] sm:$0xf0]  ;;  %v1634_v22 = vor.u32 %v1864_v13, %v1633_v11  ;;  %v1406_v23 = vor.u32 %v1807_v15, %v1405_v14  ;;  %v1393_v24 = vld [vmem:[#allocation9 + $0xc0] sm:$0xf] }
  0x2b   :  { %871 = vmatpush.bf16.msrb.mxu1 %v1442_v48  ;;  %v1501_v20 = vld [vmem:[#allocation9 + $0x198] sm:$0xf]  ;;  %v1831_v21 = vld [vmem:[#allocation9 + $0x1a0] sm:$0xf0]  ;;  %v1861_v25 = vld [vmem:[#allocation9 + $0x290] sm:$0xf0]  ;;  %v1310_v29 = vor.u32 %v1783_v19, %v1309_v18 }
  0x2c   :  { %858 = vmatpush.bf16.msra.mxu0 %v1346_v53  ;;  %884 = vmatpush.bf16.msrb.mxu2 %v1538_v54  ;;  %v1804_v26 = vld [vmem:[#allocation9 + $0xc8] sm:$0xf0]  ;;  %v1479_v28 = vld [vmem:[#allocation9 + $0x174] sm:$0xf0]  ;;  %v1502_v30 = vor.u32 %v1831_v21, %v1501_v20  ;;  %v1297_v31 = vld [vmem:[#allocation9] sm:$0xf] }
  0x2d   :  { %1294 = vmatmul.msk.bf16.vlgmr.msrb.gmra.mxu3 %vm143_vm0, %v2152_v12  ;;  %v1621_v12 = vld [vmem:[#allocation9 + $0x288] sm:$0xf]  ;;  %v1824_v27 = vld [vmem:[#allocation9 + $0x16c] sm:$0xf]  ;;  %v1489_v33 = vld [vmem:[#allocation9 + $0x180] sm:$0xf]  ;;  %v1394_v38 = vor.u32 %v1804_v26, %v1393_v24 }
  0x2e   :  { %896 = vmatpush.bf16.msra.mxu3 %v1646_v9  ;;  %v1780_v32 = vld [vmem:[#allocation9 + $0x8] sm:$0xf0]  ;;  %v1383_v36 = vld [vmem:[#allocation9 + $0xb4] sm:$0xf0]  ;;  %v1622_v37 = vor.u32 %v1861_v25, %v1621_v12  ;;  %v1482_v41 = vor.u32 %v1824_v27, %v1479_v28  ;;  %v1609_v42 = vld [vmem:[#allocation9 + $0x270] sm:$0xf] }
  0x2f   :  { %872 = vmatpush.bf16.msrb.mxu1 %v1430_v62  ;;  %v1828_v34 = vld [vmem:[#allocation9 + $0x188] sm:$0xf0]  ;;  %v1575_v40 = vld [vmem:[#allocation9 + $0x234] sm:$0xf0]  ;;  %v1858_v43 = vld [vmem:[#allocation9 + $0x278] sm:$0xf0]  ;;  %v1298_v46 = vor.u32 %v1780_v32, %v1297_v31 }
  0x30   :  { %859 = vmatpush.bf16.msra.mxu0 %v1334_v2  ;;  %885 = vmatpush.bf16.msrb.mxu2 %v1526_v3  ;;  %v1800_v35 = vld [vmem:[#allocation9 + $0xac] sm:$0xf]  ;;  %v1821_v44 = vld [vmem:[#allocation9 + $0x154] sm:$0xf]  ;;  %v1467_v45 = vld [vmem:[#allocation9 + $0x15c] sm:$0xf0]  ;;  %v1490_v47 = vor.u32 %v1828_v34, %v1489_v33  ;;  %v1610_v54 = vor.u32 %v1858_v43, %v1609_v42 }
  0x31   :  { %v1848_v39 = vld [vmem:[#allocation9 + $0x22c] sm:$0xf]  ;;  %v1386_v48 = vor.u32 %v1800_v35, %v1383_v36  ;;  %v1797_v50 = vld [vmem:[#allocation9 + $0x94] sm:$0xf]  ;;  %v1371_v51 = vld [vmem:[#allocation9 + $0x9c] sm:$0xf0]  ;;  %v1470_v55 = vor.u32 %v1821_v44, %v1467_v45 }
  0x32   :  { %897 = vmatpush.bf16.msra.mxu3 %v1634_v22  ;;  %v1578_v49 = vor.u32 %v1848_v39, %v1575_v40  ;;  %v1845_v52 = vld [vmem:[#allocation9 + $0x214] sm:$0xf]  ;;  %v1563_v53 = vld [vmem:[#allocation9 + $0x21c] sm:$0xf0]  ;;  %v1818_v56 = vld [vmem:[#allocation9 + $0x13c] sm:$0xf]  ;;  %v1374_v58 = vor.u32 %v1797_v50, %v1371_v51 }
  0x33   :  { %873 = vmatpush.bf16.msrb.mxu1 %v1418_v10  ;;  %v1455_v57 = vld [vmem:[#allocation9 + $0x144] sm:$0xf0]  ;;  %v1566_v59 = vor.u32 %v1845_v52, %v1563_v53  ;;  %v1794_v60 = vld [vmem:[#allocation9 + $0x7c] sm:$0xf]  ;;  %v1815_v1 = vld [vmem:[#allocation9 + $0x124] sm:$0xf] }
  0x34   :  { %860 = vmatpush.bf16.msra.mxu0 %v1322_v16  ;;  %886 = vmatpush.bf16.msrb.mxu2 %v1514_v17  ;;  %v1359_v61 = vld [vmem:[#allocation9 + $0x84] sm:$0xf0]  ;;  %v1842_v62 = vld [vmem:[#allocation9 + $0x1fc] sm:$0xf]  ;;  %v1458_v0 = vor.u32 %v1818_v56, %v1455_v57  ;;  %v1443_v2 = vld [vmem:[#allocation9 + $0x12c] sm:$0xf0] }
  0x35   :  { %v1551_v63 = vld [vmem:[#allocation9 + $0x204] sm:$0xf0]  ;;  %v1362_v3 = vor.u32 %v1794_v60, %v1359_v61  ;;  %v1446_v5 = vor.u32 %v1815_v1, %v1443_v2  ;;  %v1812_v6 = vld [vmem:[#allocation9 + $0x10c] sm:$0xf]  ;;  %v1431_v7 = vld [vmem:[#allocation9 + $0x114] sm:$0xf0] }
  0x36   :  { %898 = vmatpush.bf16.msra.mxu3 %v1622_v37  ;;  %v1554_v4 = vor.u32 %v1842_v62, %v1551_v63  ;;  %v1434_v8 = vor.u32 %v1812_v6, %v1431_v7  ;;  %v1597_v9 = vld [vmem:[#allocation9 + $0x258] sm:$0xf]  ;;  %v1855_v10 = vld [vmem:[#allocation9 + $0x260] sm:$0xf0]  ;;  %v1347_v14 = vld [vmem:[#allocation9 + $0x6c] sm:$0xf0] }
  0x37   :  { %874 = vmatpush.bf16.msrb.mxu1 %v1406_v23  ;;  %v1598_v11 = vor.u32 %v1855_v10, %v1597_v9  ;;  %v1791_v13 = vld [vmem:[#allocation9 + $0x64] sm:$0xf]  ;;  %v1539_v17 = vld [vmem:[#allocation9 + $0x1ec] sm:$0xf0]  ;;  %v1809_v19 = vld [vmem:[#allocation9 + $0xf4] sm:$0xf] }
  0x38   :  { %861 = vmatpush.bf16.msra.mxu0 %v1310_v29  ;;  %887 = vmatpush.bf16.msrb.mxu2 %v1502_v30  ;;  %v1839_v15 = vld [vmem:[#allocation9 + $0x1e4] sm:$0xf]  ;;  %v1350_v16 = vor.u32 %v1791_v13, %v1347_v14  ;;  %v1419_v20 = vld [vmem:[#allocation9 + $0xfc] sm:$0xf0]  ;;  %v1852_v23 = vld [vmem:[#allocation9 + $0x248] sm:$0xf0] }
  0x39   :  { %v1542_v18 = vor.u32 %v1839_v15, %v1539_v17  ;;  %v1422_v21 = vor.u32 %v1809_v19, %v1419_v20  ;;  %v1585_v22 = vld [vmem:[#allocation9 + $0x240] sm:$0xf]  ;;  %v1788_v12 = vld [vmem:[#allocation9 + $0x4c] sm:$0xf]  ;;  %v1335_v25 = vld [vmem:[#allocation9 + $0x54] sm:$0xf0] }
  0x3a   :  { %899 = vmatpush.bf16.msra.mxu3 %v1610_v54  ;;  %v1586_v24 = vor.u32 %v1852_v23, %v1585_v22  ;;  %v1836_v26 = vld [vmem:[#allocation9 + $0x1cc] sm:$0xf]  ;;  %v1338_v27 = vor.u32 %v1788_v12, %v1335_v25  ;;  %v1527_v28 = vld [vmem:[#allocation9 + $0x1d4] sm:$0xf0]  ;;  %v1806_v33 = vld [vmem:[#allocation9 + $0xdc] sm:$0xf] }
  0x3b   :  { %875 = vmatpush.bf16.msrb.mxu1 %v1394_v38  ;;  %v1872_v29 = vld [vmem:[#allocation9 + $0x2ec] sm:$0xf]  ;;  %v1671_v30 = vld [vmem:[#allocation9 + $0x2f4] sm:$0xf0]  ;;  %v1530_v31 = vor.u32 %v1836_v26, %v1527_v28  ;;  %v1407_v34 = vld [vmem:[#allocation9 + $0xe4] sm:$0xf0] }
  0x3c   :  { %862 = vmatpush.bf16.msra.mxu0 %v1298_v46  ;;  %888 = vmatpush.bf16.msrb.mxu2 %v1490_v47  ;;  %v1674_v32 = vor.u32 %v1872_v29, %v1671_v30  ;;  %v1410_v35 = vor.u32 %v1806_v33, %v1407_v34  ;;  %v1785_v36 = vld [vmem:[#allocation9 + $0x34] sm:$0xf]  ;;  %v1323_v37 = vld [vmem:[#allocation9 + $0x3c] sm:$0xf0]  ;;  %v1803_v45 = vld [vmem:[#allocation9 + $0xc4] sm:$0xf] }
  0x3d   :  { %v1833_v38 = vld [vmem:[#allocation9 + $0x1b4] sm:$0xf]  ;;  %v1326_v39 = vor.u32 %v1785_v36, %v1323_v37  ;;  %v1515_v40 = vld [vmem:[#allocation9 + $0x1bc] sm:$0xf0]  ;;  %v1395_v46 = vld [vmem:[#allocation9 + $0xcc] sm:$0xf0] }
  0x3e   :  { %900 = vmatpush.bf16.msra.mxu3 %v1598_v11  ;;  %v1659_v42 = vld [vmem:[#allocation9 + $0x2dc] sm:$0xf0]  ;;  %v1518_v43 = vor.u32 %v1833_v38, %v1515_v40  ;;  %v1398_v47 = vor.u32 %v1803_v45, %v1395_v46  ;;  %v1830_v50 = vld [vmem:[#allocation9 + $0x19c] sm:$0xf]  ;;  %v1503_v52 = vld [vmem:[#allocation9 + $0x1a4] sm:$0xf0] }
  0x3f   :  { %920 = vmatpush.bf16.msra.mxu1 %v1482_v41  ;;  %v1869_v41 = vld [vmem:[#allocation9 + $0x2d4] sm:$0xf]  ;;  %v1866_v53 = vld [vmem:[#allocation9 + $0x2bc] sm:$0xf]  ;;  %v1647_v54 = vld [vmem:[#allocation9 + $0x2c4] sm:$0xf0] }
  0x40   :  { %907 = vmatpush.bf16.msrb.mxu0 %v1386_v48  ;;  %933 = vmatpush.bf16.msra.mxu2 %v1578_v49  ;;  %v1662_v44 = vor.u32 %v1869_v41, %v1659_v42  ;;  %v1782_v48 = vld [vmem:[#allocation9 + $0x1c] sm:$0xf]  ;;  %v1311_v49 = vld [vmem:[#allocation9 + $0x24] sm:$0xf0]  ;;  %v1650_v56 = vor.u32 %v1866_v53, %v1647_v54  ;;  %v1779_v57 = vld [vmem:[#allocation9 + $0x4] sm:$0xf] }
  0x41   :  { %v1314_v51 = vor.u32 %v1782_v48, %v1311_v49  ;;  %v1491_v61 = vld [vmem:[#allocation9 + $0x18c] sm:$0xf0]  ;;  %v1863_v62 = vld [vmem:[#allocation9 + $0x2a4] sm:$0xf]  ;;  %v1860_v2 = vld [vmem:[#allocation9 + $0x28c] sm:$0xf] }
  0x42   :  { %901 = vmatpush.bf16.msra.mxu3 %v1586_v24  ;;  %v1635_v63 = vld [vmem:[#allocation9 + $0x2ac] sm:$0xf0]  ;;  %v1611_v6 = vld [vmem:[#allocation9 + $0x27c] sm:$0xf0]  ;;  %v1854_v9 = vld [vmem:[#allocation9 + $0x25c] sm:$0xf] }
  0x43   :  { %921 = vmatpush.bf16.msra.mxu1 %v1470_v55  ;;  %v1506_v55 = vor.u32 %v1830_v50, %v1503_v52  ;;  %v1638_v1 = vor.u32 %v1863_v62, %v1635_v63  ;;  %v1599_v10 = vld [vmem:[#allocation9 + $0x264] sm:$0xf0]  ;;  %v1851_v14 = vld [vmem:[#allocation9 + $0x244] sm:$0xf]  ;;  %v1587_v15 = vld [vmem:[#allocation9 + $0x24c] sm:$0xf0] }
  0x44   :  { %908 = vmatpush.bf16.msrb.mxu0 %v1374_v58  ;;  %934 = vmatpush.bf16.msra.mxu2 %v1566_v59  ;;  %v1299_v58 = vld [vmem:[#allocation9 + $0xc] sm:$0xf0]  ;;  %v1827_v59 = vld [vmem:[#allocation9 + $0x184] sm:$0xf]  ;;  %v1602_v11 = vor.u32 %v1854_v9, %v1599_v10  ;;  %v1590_v17 = vor.u32 %v1851_v14, %v1587_v15  ;;  %v1826_v12 = vld [vmem:[#allocation9 + $0x178] sm:$0xf0] }
  0x45   :  { %v1302_v60 = vor.u32 %v1779_v57, %v1299_v58  ;;  %v1485_v24 = vld [vmem:[#allocation9 + $0x170] sm:$0xf]  ;;  %v1473_v30 = vld [vmem:[#allocation9 + $0x158] sm:$0xf]  ;;  %v1802_v33 = vld [vmem:[#allocation9 + $0xb8] sm:$0xf0] }
  0x46   :  { %946 = vmatpush.bf16.msrb.mxu3 %v1674_v32  ;;  %v1486_v28 = vor.u32 %v1826_v12, %v1485_v24  ;;  %v1389_v32 = vld [vmem:[#allocation9 + $0xb0] sm:$0xf]  ;;  %v1461_v41 = vld [vmem:[#allocation9 + $0x140] sm:$0xf]  ;;  %v1820_v42 = vld [vmem:[#allocation9 + $0x148] sm:$0xf0] }
  0x47   :  { %922 = vmatpush.bf16.msra.mxu1 %v1458_v0  ;;  %v1494_v0 = vor.u32 %v1827_v59, %v1491_v61  ;;  %v1581_v34 = vld [vmem:[#allocation9 + $0x230] sm:$0xf]  ;;  %v1377_v46 = vld [vmem:[#allocation9 + $0x98] sm:$0xf]  ;;  %v1847_v50 = vld [vmem:[#allocation9 + $0x220] sm:$0xf0] }
  0x48   :  { %909 = vmatpush.bf16.msrb.mxu0 %v1362_v3  ;;  %935 = vmatpush.bf16.msra.mxu2 %v1554_v4  ;;  %v1623_v3 = vld [vmem:[#allocation9 + $0x294] sm:$0xf0]  ;;  %v1449_v54 = vld [vmem:[#allocation9 + $0x128] sm:$0xf]  ;;  %v1365_v57 = vld [vmem:[#allocation9 + $0x80] sm:$0xf] }
  0x49   :  { %v1626_v4 = vor.u32 %v1860_v2, %v1623_v3  ;;  %v1569_v49 = vld [vmem:[#allocation9 + $0x218] sm:$0xf]  ;;  %v1796_v58 = vld [vmem:[#allocation9 + $0x88] sm:$0xf0]  ;;  %v1557_v59 = vld [vmem:[#allocation9 + $0x200] sm:$0xf] }
  0x4a   :  { %947 = vmatpush.bf16.msrb.mxu3 %v1662_v44  ;;  %v1814_v2 = vld [vmem:[#allocation9 + $0x118] sm:$0xf0]  ;;  %v1425_v10 = vld [vmem:[#allocation9 + $0xf8] sm:$0xf]  ;;  %v1341_v14 = vld [vmem:[#allocation9 + $0x50] sm:$0xf] }
  0x4b   :  { %923 = vmatpush.bf16.msra.mxu1 %v1446_v5  ;;  %v1857_v5 = vld [vmem:[#allocation9 + $0x274] sm:$0xf]  ;;  %v1790_v15 = vld [vmem:[#allocation9 + $0x58] sm:$0xf0]  ;;  %v1808_v24 = vld [vmem:[#allocation9 + $0xe8] sm:$0xf0] }
  0x4c   :  { %910 = vmatpush.bf16.msrb.mxu0 %v1350_v16  ;;  %936 = vmatpush.bf16.msra.mxu2 %v1542_v18  ;;  %v1614_v7 = vor.u32 %v1857_v5, %v1611_v6  ;;  %v1793_v5 = vld [vmem:[#allocation9 + $0x70] sm:$0xf0]  ;;  %v1545_v6 = vld [vmem:[#allocation9 + $0x1e8] sm:$0xf]  ;;  %s1263_s18 = sshll.u32 %s2208_s8, 4  ;;  %s1264_s18 = int_to_ptr.hbm [resolvable:$true] %s1263_s18 }
  0x4e   :  { %948 = vmatpush.bf16.msrb.mxu3 %v1650_v56  ;;  %v1570_v56 = vor.u32 %v1847_v50, %v1569_v49  ;;  %v1868_v49 = vld [vmem:[#allocation9 + $0x2c8] sm:$0xf0] }
  0x4f   :  { %924 = vmatpush.bf16.msra.mxu1 %v1434_v8  ;;  %v2162_v8 = vld [vmem:[#allocation8] sm:$0xf] }
  0x50   :  { %911 = vmatpush.bf16.msrb.mxu0 %v1338_v27  ;;  %937 = vmatpush.bf16.msra.mxu2 %v1530_v31  ;;  %v116_v13 = vperm.slane %v2162_v8, 1  ;;  %v115_v19 = vperm.slane %v2162_v8, 0  ;;  %v117_v20 = vperm.slane %v2162_v8, 2  ;;  %v1823_v31 = vld [vmem:[#allocation9 + $0x160] sm:$0xf0]  ;;  %v118_v52 = vperm.slane %v2162_v8, 3 }
  0x51   :  { %v1474_v37 = vor.u32 %v1823_v31, %v1473_v30  ;;  %v1787_v30 = vld [vmem:[#allocation9 + $0x40] sm:$0xf0]  ;;  %v1521_v31 = vld [vmem:[#allocation9 + $0x1b8] sm:$0xf] }
  0x52   :  { %949 = vmatpush.bf16.msrb.mxu3 %v1638_v1  ;;  %v1437_v1 = vld [vmem:[#allocation9 + $0x110] sm:$0xf] }
  0x53   :  { %925 = vmatpush.bf16.msra.mxu1 %v1422_v21  ;;  %v1438_v8 = vor.u32 %v1814_v2, %v1437_v1  ;;  %v1617_v1 = vld [vmem:[#allocation9 + $0x278] sm:$0xf]  ;;  %v1859_v2 = vld [vmem:[#allocation9 + $0x280] sm:$0xf0] }
  0x54   :  { %912 = vmatpush.bf16.msrb.mxu0 %v1326_v39  ;;  %938 = vmatpush.bf16.msra.mxu2 %v1518_v43  ;;  %v1390_v39 = vor.u32 %v1802_v33, %v1389_v32  ;;  %v1835_v32 = vld [vmem:[#allocation9 + $0x1c0] sm:$0xf0] }
  0x56   :  { %950 = vmatpush.bf16.msrb.mxu3 %v1626_v4  ;;  %v1353_v4 = vld [vmem:[#allocation9 + $0x68] sm:$0xf] }
  0x57   :  { %926 = vmatpush.bf16.msra.mxu1 %v1410_v35  ;;  %v1850_v35 = vld [vmem:[#allocation9 + $0x238] sm:$0xf0]  ;;  %v1354_v9 = vor.u32 %v1793_v5, %v1353_v4  ;;  %v1605_v4 = vld [vmem:[#allocation9 + $0x260] sm:$0xf]  ;;  %v1856_v5 = vld [vmem:[#allocation9 + $0x268] sm:$0xf0] }
  0x58   :  { %913 = vmatpush.bf16.msrb.mxu0 %v1314_v51  ;;  %939 = vmatpush.bf16.msra.mxu2 %v1506_v55  ;;  %v1582_v45 = vor.u32 %v1850_v35, %v1581_v34  ;;  %v1462_v51 = vor.u32 %v1820_v42, %v1461_v41  ;;  %v1817_v55 = vld [vmem:[#allocation9 + $0x130] sm:$0xf0]  ;;  %v1665_v34 = vld [vmem:[#allocation9 + $0x2d8] sm:$0xf]  ;;  %v1871_v35 = vld [vmem:[#allocation9 + $0x2e0] sm:$0xf0] }
  0x59   :  { %v1450_v62 = vor.u32 %v1817_v55, %v1449_v54  ;;  %v1666_v41 = vor.u32 %v1871_v35, %v1665_v34  ;;  %v1784_v42 = vld [vmem:[#allocation9 + $0x28] sm:$0xf0]  ;;  %v1781_v54 = vld [vmem:[#allocation9 + $0x10] sm:$0xf0]  ;;  %v1497_v55 = vld [vmem:[#allocation9 + $0x188] sm:$0xf] }
  0x5a   :  { %951 = vmatpush.bf16.msrb.mxu3 %v1614_v7  ;;  %v1841_v7 = vld [vmem:[#allocation9 + $0x1f0] sm:$0xf0] }
  0x5b   :  { %927 = vmatpush.bf16.msra.mxu1 %v1398_v47  ;;  %v1799_v47 = vld [vmem:[#allocation9 + $0xa0] sm:$0xf0] }
  0x5c   :  { %914 = vmatpush.bf16.msrb.mxu0 %v1302_v60  ;;  %940 = vmatpush.bf16.msra.mxu2 %v1494_v0  ;;  %v1378_v53 = vor.u32 %v1799_v47, %v1377_v46  ;;  %v1844_v60 = vld [vmem:[#allocation9 + $0x208] sm:$0xf0]  ;;  %v1366_v0 = vor.u32 %v1796_v58, %v1365_v57  ;;  %v1653_v47 = vld [vmem:[#allocation9 + $0x2c0] sm:$0xf]  ;;  %v1641_v57 = vld [vmem:[#allocation9 + $0x2a8] sm:$0xf] }
  0x5d   :  { %v1558_v3 = vor.u32 %v1844_v60, %v1557_v59  ;;  %v1865_v58 = vld [vmem:[#allocation9 + $0x2b0] sm:$0xf0] }
  0x5e   :  { %952 = vmatpush.bf16.msrb.mxu3 %v1602_v11  ;;  %v1811_v11 = vld [vmem:[#allocation9 + $0x100] sm:$0xf0] }
  0x62   :  { %953 = vmatpush.bf16.msrb.mxu3 %v1590_v17  ;;  %v1838_v17 = vld [vmem:[#allocation9 + $0x1d8] sm:$0xf0] }
  0x9b   :  { %v169_v16 = vpop.f32.mrf.mxu1 }
  0x9c   :  { %v170_v18 = vadd.f32 %v169_v16, %v116_v13  ;;  %v1546_v13 = vor.u32 %v1841_v7, %v1545_v6  ;;  %v1533_v16 = vld [vmem:[#allocation9 + $0x1d0] sm:$0xf]  ;;  %v1593_v6 = vld [vmem:[#allocation9 + $0x248] sm:$0xf]  ;;  %v1853_v7 = vld [vmem:[#allocation9 + $0x250] sm:$0xf0] }
  0x9e   :  { %1912 = vtanh.f32 %v170_v18 }
  0xa0   :  { %v156_v21 = vpop.f32.mrf.mxu3 }
  0xa1   :  { %v157_v22 = vadd.f32 %v156_v21, %v115_v19  ;;  %v1426_v19 = vor.u32 %v1811_v11, %v1425_v10  ;;  %v1874_v21 = vld [vmem:[#allocation9 + $0x2f8] sm:$0xf0]  ;;  %v1881_v10 = vld [vmem:[#allocation11 + $0x30] sm:$0xff] }
  0xa2   :  { %v182_v23 = vpop.f32.mrf.mxu2  ;;  %v1878_v11 = vld [vmem:[#allocation11 + $0x18] sm:$0xff] }
  0xa3   :  { %v183_v25 = vadd.f32 %v182_v23, %v117_v20  ;;  %1914 = vtanh.f32 %v157_v22  ;;  %v171_v26 = vpop.f32.mrf.mxu1  ;;  %v1677_v20 = vld [vmem:[#allocation9 + $0x2f0] sm:$0xf]  ;;  %v1413_v23 = vld [vmem:[#allocation9 + $0xe0] sm:$0xf] }
  0xa4   :  { %v1913_v27 = vpop.eup %1912  ;;  %v1534_v26 = vor.u32 %v1838_v17, %v1533_v16  ;;  %v1414_v33 = vor.u32 %v1808_v24, %v1413_v23  ;;  %v1876_v17 = vld [vmem:[#allocation11 + $0x8] sm:$0xff]  ;;  %v1886_v23 = vld [vmem:[#allocation11 + $0x58] sm:$0xff] }
  0xa5   :  { %1916 = vtanh.f32 %v183_v25  ;;  %v2167_v29 = vpack.c.bf16 %v1913_v27, %v1913_v27  ;;  %v1342_v25 = vor.u32 %v1790_v15, %v1341_v14  ;;  %v1329_v27 = vld [vmem:[#allocation9 + $0x38] sm:$0xf]  ;;  %v1877_v14 = vld [vmem:[#allocation11 + $0x10] sm:$0xff] }
  0xa6   :  { %v1889_v15 = vld [vmem:[#allocation11 + $0x70] sm:$0xff]  ;;  %v1898_v24 = vld [vmem:[#allocation11 + $0xb8] sm:$0xff] }
  0xa7   :  { %876 = vmatmul.bf16.vlgmr.msrb.gmra.mxu1 %v2167_v29 }
  0xa8   :  { %972 = vmatpush.bf16.msrb.mxu1 %v1486_v28  ;;  %v158_v36 = vpop.f32.mrf.mxu3  ;;  %v1678_v28 = vor.u32 %v1874_v21, %v1677_v20  ;;  %v1887_v20 = vld [vmem:[#allocation11 + $0x60] sm:$0xff] }
  0xa9   :  { %v1915_v38 = vpop.eup %1914  ;;  %v1401_v36 = vld [vmem:[#allocation9 + $0xc8] sm:$0xf] }
  0xaa   :  { %v184_v40 = vpop.f32.mrf.mxu2  ;;  %v2170_v44 = vpack.c.bf16 %v1915_v38, %v1915_v38  ;;  %v1330_v38 = vor.u32 %v1787_v30, %v1329_v27  ;;  %v335_v27 = vld [vmem:[%s2205_s5] sm:$0x7] }
  0xab   :  { %v1917_v43 = vpop.eup %1916  ;;  %v1317_v40 = vld [vmem:[#allocation9 + $0x20] sm:$0xf]  ;;  %v337_v30 = vperm.slane %v335_v27, 0 }
  0xac   :  { %v2172_v48 = vpack.c.bf16 %v1917_v43, %v1917_v43  ;;  %973 = vmatpush.bf16.msrb.mxu1 %v1474_v37  ;;  %863 = vmatmul.bf16.vlgmr.msra.gmra.mxu0 %v2170_v44  ;;  %v1805_v37 = vld [vmem:[#allocation9 + $0xd0] sm:$0xf0]  ;;  %v1509_v43 = vld [vmem:[#allocation9 + $0x1a0] sm:$0xf]  ;;  %v1318_v50 = vor.u32 %v1784_v42, %v1317_v40 }
  0xad   :  { %959 = vmatpush.bf16.msra.mxu0 %v1390_v39  ;;  %v1522_v39 = vor.u32 %v1835_v32, %v1521_v31  ;;  %v1402_v46 = vor.u32 %v1805_v37, %v1401_v36  ;;  %v1884_v32 = vld [vmem:[#allocation11 + $0x48] sm:$0xff]  ;;  %v1883_v36 = vld [vmem:[#allocation11 + $0x40] sm:$0xff] }
  0xae   :  { %889 = vmatmul.bf16.vlgmr.msrb.gmra.mxu2 %v2172_v48  ;;  %v1895_v37 = vld [vmem:[#allocation11 + $0xa0] sm:$0xff] }
  0xaf   :  { %985 = vmatpush.bf16.msrb.mxu2 %v1582_v45  ;;  %v1832_v45 = vld [vmem:[#allocation9 + $0x1a8] sm:$0xf0] }
  0xb0   :  { %974 = vmatpush.bf16.msrb.mxu1 %v1462_v51  ;;  %v195_v61 = vpop.f32.mrf.mxu3  ;;  %v1510_v51 = vor.u32 %v1832_v45, %v1509_v43 }
  0xb1   :  { %v196_v63 = vadd.f32 %v195_v61, %v118_v52  ;;  %960 = vmatpush.bf16.msra.mxu0 %v1378_v53  ;;  %v1305_v52 = vld [vmem:[#allocation9 + $0x8] sm:$0xf]  ;;  %v1654_v53 = vor.u32 %v1868_v49, %v1653_v47  ;;  %v1642_v61 = vor.u32 %v1865_v58, %v1641_v57  ;;  %v1893_v47 = vld [vmem:[#allocation11 + $0x90] sm:$0xff]  ;;  %v1891_v57 = vld [vmem:[#allocation11 + $0x80] sm:$0xff] }
  0xb2   :  { %v1306_v59 = vor.u32 %v1781_v54, %v1305_v52  ;;  %v1892_v52 = vld [vmem:[#allocation11 + $0x88] sm:$0xff] }
  0xb3   :  { %986 = vmatpush.bf16.msrb.mxu2 %v1570_v56  ;;  %1918 = vtanh.f32 %v196_v63  ;;  %v1829_v56 = vld [vmem:[#allocation9 + $0x190] sm:$0xf0]  ;;  %v1862_v63 = vld [vmem:[#allocation9 + $0x298] sm:$0xf0] }
  0xb4   :  { %975 = vmatpush.bf16.msrb.mxu1 %v1450_v62  ;;  %v1498_v60 = vor.u32 %v1829_v56, %v1497_v55  ;;  %v1629_v62 = vld [vmem:[#allocation9 + $0x290] sm:$0xf] }
  0xb5   :  { %961 = vmatpush.bf16.msra.mxu0 %v1366_v0  ;;  %v1630_v0 = vor.u32 %v1862_v63, %v1629_v62 }
  0xb7   :  { %987 = vmatpush.bf16.msrb.mxu2 %v1558_v3  ;;  %928 = vmatmul.bf16.vlgmr.msra.gmra.mxu1 %v2167_v29  ;;  %v1618_v3 = vor.u32 %v1859_v2, %v1617_v1 }
  0xb8   :  { %976 = vmatpush.bf16.msrb.mxu1 %v1438_v8  ;;  %v197_v18 = vpop.f32.mrf.mxu3  ;;  %v1594_v8 = vor.u32 %v1853_v7, %v1593_v6 }
  0xb9   :  { %v1919_v22 = vpop.eup %1918  ;;  %962 = vmatpush.bf16.msra.mxu0 %v1354_v9  ;;  %v1882_v9 = vld [vmem:[#allocation11 + $0x38] sm:$0xff]  ;;  %v1888_v18 = vld [vmem:[#allocation11 + $0x68] sm:$0xff] }
  0xba   :  { %v2178_v12 = vpack.c.bf16 %v1919_v22, %v1919_v22 }
  0xbb   :  { %988 = vmatpush.bf16.msrb.mxu2 %v1546_v13  ;;  %v1890_v13 = vld [vmem:[#allocation11 + $0x78] sm:$0xff] }
  0xbc   :  { %977 = vmatpush.bf16.msrb.mxu1 %v1426_v19  ;;  %902 = vmatmul.bf16.vlgmr.msra.gmra.mxu3 %v2178_v12  ;;  %v1875_v19 = vld [vmem:[#allocation11] sm:$0xff] }
  0xbd   :  { %915 = vmatmul.bf16.vlgmr.msrb.gmra.mxu0 %v2170_v44  ;;  %998 = vmatpush.bf16.msra.mxu3 %v1678_v28 }
  0xbe   :  { %941 = vmatmul.bf16.vlgmr.msra.gmra.mxu2 %v2172_v48  ;;  %963 = vmatpush.bf16.msra.mxu0 %v1342_v25  ;;  %v1885_v25 = vld [vmem:[#allocation11 + $0x50] sm:$0xff] }
  0xbf   :  { %989 = vmatpush.bf16.msrb.mxu2 %v1534_v26  ;;  %v1897_v26 = vld [vmem:[#allocation11 + $0xb0] sm:$0xff] }
  0xc0   :  { %978 = vmatpush.bf16.msrb.mxu1 %v1414_v33  ;;  %v1896_v33 = vld [vmem:[#allocation11 + $0xa8] sm:$0xff] }
  0xc1   :  { %999 = vmatpush.bf16.msra.mxu3 %v1666_v41 }
  0xc2   :  { %964 = vmatpush.bf16.msra.mxu0 %v1330_v38 }
  0xc3   :  { %990 = vmatpush.bf16.msrb.mxu2 %v1522_v39  ;;  %v1894_v39 = vld [vmem:[#allocation11 + $0x98] sm:$0xff] }
  0xc4   :  { %979 = vmatpush.bf16.msrb.mxu1 %v1402_v46 }
  0xc5   :  { %1000 = vmatpush.bf16.msra.mxu3 %v1654_v53 }
  0xc6   :  { %965 = vmatpush.bf16.msra.mxu0 %v1318_v50  ;;  %v338_v50 = vperm.slane %v335_v27, 1 }
  0xc7   :  { %991 = vmatpush.bf16.msrb.mxu2 %v1510_v51  ;;  %980 = vmatmul.bf16.vlgmr.msrb.gmra.mxu1 %v2167_v29  ;;  %v1606_v29 = vor.u32 %v1856_v5, %v1605_v4 }
  0xc8   :  { %1226 = vmatpush.bf16.msra.mxu1 %v1890_v13 }
  0xc9   :  { %1001 = vmatpush.bf16.msra.mxu3 %v1642_v61 }
  0xca   :  { %966 = vmatpush.bf16.msra.mxu0 %v1306_v59 }
  0xcb   :  { %992 = vmatpush.bf16.msrb.mxu2 %v1498_v60 }
  0xcc   :  { %954 = vmatmul.bf16.vlgmr.msrb.gmra.mxu3 %v2178_v12  ;;  %1227 = vmatpush.bf16.msra.mxu1 %v1889_v15 }
  0xcd   :  { %967 = vmatmul.bf16.vlgmr.msra.gmra.mxu0 %v2170_v44  ;;  %1002 = vmatpush.bf16.msra.mxu3 %v1630_v0  ;;  %v1880_v44 = vld [vmem:[#allocation11 + $0x28] sm:$0xff] }
  0xce   :  { %993 = vmatmul.bf16.vlgmr.msrb.gmra.mxu2 %v2172_v48  ;;  %1213 = vmatpush.bf16.msrb.mxu0 %v1882_v9  ;;  %v1879_v48 = vld [vmem:[#allocation11 + $0x20] sm:$0xff] }
  0xcf   :  { %1239 = vmatpush.bf16.msra.mxu2 %v1898_v24 }
  0xd0   :  { %1228 = vmatpush.bf16.msra.mxu1 %v1888_v18  ;;  %v1911_v18 = vld [vmem:[%s2207_s7] ss:$0 sm:$0xff] }
  0xd1   :  { %1003 = vmatpush.bf16.msra.mxu3 %v1618_v3  ;;  %v339_v3 = vperm.slane %v335_v27, 2 }
  0xd2   :  { %1214 = vmatpush.bf16.msrb.mxu0 %v1881_v10 }
  0xd3   :  { %1240 = vmatpush.bf16.msra.mxu2 %v1897_v26 }
  0xd4   :  { %1229 = vmatpush.bf16.msra.mxu1 %v1887_v20 }
  0xd5   :  { %1004 = vmatpush.bf16.msra.mxu3 %v1606_v29 }
  0xd6   :  { %1215 = vmatpush.bf16.msrb.mxu0 %v1880_v44 }
  0xd7   :  { %1241 = vmatpush.bf16.msra.mxu2 %v1896_v33 }
  0xd8   :  { %1230 = vmatpush.bf16.msra.mxu1 %v1886_v23  ;;  %v1253_v23 = vstv %s2200_s0 }
  0xd9   :  { %1005 = vmatpush.bf16.msra.mxu3 %v1594_v8 }
  0xda   :  { %1216 = vmatpush.bf16.msrb.mxu0 %v1879_v48 }
  0xdb   :  { %1242 = vmatpush.bf16.msra.mxu2 %v1895_v37 }
  0xdc   :  { %1006 = vmatmul.bf16.vlgmr.msra.gmra.mxu3 %v2178_v12  ;;  %1231 = vmatpush.bf16.msra.mxu1 %v1885_v25 }
  0xde   :  { %1217 = vmatpush.bf16.msrb.mxu0 %v1878_v11 }
  0xdf   :  { %1243 = vmatpush.bf16.msra.mxu2 %v1894_v39 }
  0xe0   :  { %1232 = vmatpush.bf16.msra.mxu1 %v1884_v32 }
  0xe2   :  { %1218 = vmatpush.bf16.msrb.mxu0 %v1877_v14 }
  0xe3   :  { %1244 = vmatpush.bf16.msra.mxu2 %v1893_v47 }
  0xe4   :  { %1233 = vmatpush.bf16.msra.mxu1 %v1883_v36 }
  0xe6   :  { %1219 = vmatpush.bf16.msrb.mxu0 %v1876_v17 }
  0xe7   :  { %1245 = vmatpush.bf16.msra.mxu2 %v1892_v52 }
  0xea   :  { %1220 = vmatpush.bf16.msrb.mxu0 %v1875_v19 }
  0xeb   :  { %1246 = vmatpush.bf16.msra.mxu2 %v1891_v57 }
 0x124   :  { %v877_v16 = vpop.f32.mrf.mxu1 }
 0x129   :  { %v864_v21 = vpop.f32.mrf.mxu0 }
 0x12a   :  { %v865_v34 = vadd.f32 %v864_v21, %v337_v30 }
 0x12c   :  { %v879_v22 = vpop.f32.mrf.mxu1  ;;  %v878_v40 = vadd.f32 %v877_v16, %v865_v34 }
 0x131   :  { %v890_v12 = vpop.f32.mrf.mxu2  ;;  %v866_v28 = vpop.f32.mrf.mxu0 }
 0x132   :  { %v891_v42 = vadd.f32 %v890_v12, %v878_v40 }
 0x134   :  { %v929_v31 = vpop.f32.mrf.mxu1 }
 0x139   :  { %v892_v35 = vpop.f32.mrf.mxu2 }
 0x13a   :  { %v916_v38 = vpop.f32.mrf.mxu0 }
 0x13b   :  { %v917_v55 = vadd.f32 %v916_v38, %v338_v50 }
 0x13c   :  { %v931_v41 = vpop.f32.mrf.mxu1 }
 0x13d   :  { %v930_v60 = vadd.f32 %v929_v31, %v917_v55 }
 0x13f   :  { %v903_v43 = vpop.f32.mrf.mxu3 }
 0x140   :  { %v904_v45 = vadd.f32 %v903_v43, %v891_v42 }
 0x141   :  { %v942_v46 = vpop.f32.mrf.mxu2 }
 0x142   :  { %1920 = vtanh.f32 %v904_v45  ;;  %v918_v49 = vpop.f32.mrf.mxu0  ;;  %v943_v62 = vadd.f32 %v942_v46, %v930_v60 }
 0x144   :  { %v981_v51 = vpop.f32.mrf.mxu1 }
 0x147   :  { %v905_v53 = vpop.f32.mrf.mxu3 }
 0x148   :  { %v1921_v54 = vpop.eup %1920 }
 0x149   :  { %v944_v56 = vpop.f32.mrf.mxu2  ;;  %v1014_v58 = vpack.c.bf16 %v1921_v54, %v1921_v54 }
 0x14a   :  { %v968_v59 = vpop.f32.mrf.mxu0 }
 0x14b   :  { %1221 = vmatmul.bf16.vlgmr.msrb.gmra.mxu0 %v1014_v58  ;;  %v969_v7 = vadd.f32 %v968_v59, %v339_v3 }
 0x14c   :  { %v983_v61 = vpop.f32.mrf.mxu1 }
 0x14d   :  { %v982_v8 = vadd.f32 %v981_v51, %v969_v7 }
 0x14f   :  { %v955_v63 = vpop.f32.mrf.mxu3 }
 0x150   :  { %v956_v0 = vadd.f32 %v955_v63, %v943_v62 }
 0x151   :  { %v994_v1 = vpop.f32.mrf.mxu2 }
 0x152   :  { %1922 = vtanh.f32 %v956_v0  ;;  %v970_v2 = vpop.f32.mrf.mxu0  ;;  %v995_v9 = vadd.f32 %v994_v1, %v982_v8 }
 0x157   :  { %v957_v4 = vpop.f32.mrf.mxu3 }
 0x158   :  { %v1923_v5 = vpop.eup %1922 }
 0x159   :  { %v996_v29 = vpop.f32.mrf.mxu2  ;;  %v1015_v6 = vpack.c.bf16 %v1923_v5, %v1923_v5 }
 0x15b   :  { %1234 = vmatmul.bf16.vlgmr.msra.gmra.mxu1 %v1015_v6 }
 0x15f   :  { %v1007_v10 = vpop.f32.mrf.mxu3 }
 0x160   :  { %v1008_v44 = vadd.f32 %v1007_v10, %v995_v9 }
 0x162   :  { %1924 = vtanh.f32 %v1008_v44 }
 0x167   :  { %v1009_v48 = vpop.f32.mrf.mxu3 }
 0x168   :  { %v1925_v11 = vpop.eup %1924 }
 0x169   :  { %v1016_v13 = vpack.c.bf16 %v1925_v11, %v1925_v11 }
 0x16b   :  { %1247 = vmatmul.bf16.vlgmr.msra.gmra.mxu2 %v1016_v13 }
 0x1c8   :  { %v1222_v14 = vpop.f32.mrf.mxu0 }
 0x1c9   :  { %v1223_v19 = vadd.f32 %v1911_v18, %v1222_v14 }
 0x1d0   :  { %v1224_v15 = vpop.f32.mrf.mxu0 }
 0x1d8   :  { %v1235_v16 = vpop.f32.mrf.mxu1 }
 0x1d9   :  { %v1236_v20 = vadd.f32 %v1235_v16, %v1223_v19 }
 0x1e0   :  { %v1237_v17 = vpop.f32.mrf.mxu1 }
 0x1ee   :  { %v1248_v21 = vpop.f32.mrf.mxu2 }
 0x1ef   :  { %v1249_v22 = vadd.f32 %v1248_v21, %v1236_v20 }
 0x1f1   :  { %1926 = vtanh.f32 %v1249_v22 }
 0x1f6   :  { %v1250_v24 = vpop.f32.mrf.mxu2 }
 0x1f7   :  { %v1927_v12 = vpop.eup %1926 }
 0x1f8   :  { %v1254_v25 = vmul.f32 %v1927_v12, %v1253_v23 }
 0x1fa   :  { %1255 = vst [vmem:[#allocation12] sm:$0xff] %v1254_v25 }
 0x1fb   :  { %1266 = dma.vmem_to_hbm [thread:$0]  %s1262_s15, 128, %s1264_s18, [#allocation5]  }
 0x1fc   :  { %2078 = dma.done.wait [#allocation5], 128  }
 0x1fd   :  { %2079 = vsyncadd [#allocation5], 4294967168 }
 0x1fe   :  { %1271 = vsyncpa [#allocation4], 1 }
 0x1ff   :  { %1272 = vsyncpa [#allocation7], 1 }
 0x200   :  { %1273 = vsyncpa [#allocation10], 1 }
 0x201   :  { %1274 = vsyncpa [#allocation5], 1 }

</bundles_post_ra>
